<compile_context>
chip_gen: v7x
topology: tpu7x:2x2x1
jax: 0.10.0
libtpu: 0.0.40
codegen_flags: <defaults>
</compile_context>

<pallas_src>
import functools

import jax
import jax.numpy as jnp
from jax.experimental import pallas as pl
from jax.experimental.pallas import tpu as pltpu

_LANES = 128


def _round_up(x, m):
    return (x + m - 1) // m * m


def _focal_loss_kernel(logits_ref, targets_ref, alpha_ref, out_ref, *,
                       gamma, num_classes, n_valid, tile_r, needs_mask):
    # logits_ref: (C, tile_r, 128)  targets_ref/out_ref: (tile_r, 128)
    # alpha_ref:  (C,) f32 in SMEM
    t = targets_ref[...]                                         # int32 (tile_r, 128)

    # Unrolled class rows (C is small & static); cast to f32 in-VMEM.
    rows = [logits_ref[k].astype(jnp.float32) for k in range(num_classes)]

    # Row-wise max over classes (pure VPU maximum, no XLU reduce).
    m = rows[0]
    for k in range(1, num_classes):
        m = jnp.maximum(m, rows[k])

    # logsumexp + target-logit / alpha gather via per-lane selects.
    sum_exp = jnp.zeros_like(m)
    logit_t = jnp.zeros_like(m)
    at = jnp.zeros_like(m)
    for k in range(num_classes):
        shifted = rows[k] - m
        sum_exp = sum_exp + jnp.exp(shifted)
        sel = t == k
        logit_t = jnp.where(sel, shifted, logit_t)
        at = jnp.where(sel, alpha_ref[k], at)                    # scalar from SMEM

    ce = jnp.log(sum_exp) - logit_t                              # cross-entropy >= 0
    pt = jnp.exp(-ce)
    ce = at * ce

    one_minus_pt = jnp.maximum(1.0 - pt, 0.0)                    # guard f32 rounding
    g = float(gamma)
    if g == 0.0:
        w = jnp.ones_like(one_minus_pt)
    elif g == int(g) and 1 <= int(g) <= 8:
        w = one_minus_pt
        for _ in range(int(g) - 1):
            w = w * one_minus_pt
    else:
        w = jnp.power(one_minus_pt, jnp.float32(g))
    focal = w * ce

    if needs_mask:
        sub = jax.lax.broadcasted_iota(jnp.int32, focal.shape, 0)
        lane = jax.lax.broadcasted_iota(jnp.int32, focal.shape, 1)
        gidx = (pl.program_id(0) * tile_r + sub) * _LANES + lane
        focal = jnp.where(gidx < n_valid, focal, 0.0)

    out_ref[...] = focal


def focal_loss(inputs, targets, alpha=None, gamma=1.0, reduction="mean",
               max_tile_rows=128):
    """Pallas implementation of FocalLoss.forward.

    inputs:  (N, C) float logits (any float dtype; computed in f32)
    targets: (N,)   int class indices
    alpha:   optional (C,) per-class weights
    """
    inputs = jnp.asarray(inputs)                 # keep native dtype (no wrapper upcast)
    n, c = inputs.shape

    # Lane-dense tiling of the batch: N -> (rows, 128), rows tiled by tile_r.
    rows = pl.cdiv(n, _LANES)
    if rows >= max_tile_rows:
        tile_r = max_tile_rows
    else:
        tile_r = _round_up(max(rows, 1), 8)
    rows_pad = _round_up(rows, tile_r)
    n_pad = rows_pad * _LANES
    num_tiles = rows_pad // tile_r

    logits_cn = jnp.transpose(inputs)                            # (C, N), native dtype
    targets_i = jnp.asarray(targets, jnp.int32)
    if n_pad != n:
        logits_cn = jnp.pad(logits_cn, ((0, 0), (0, n_pad - n)))
        targets_i = jnp.pad(targets_i, (0, n_pad - n))
    logits_r = logits_cn.reshape(c, rows_pad, _LANES)
    targets_r = targets_i.reshape(rows_pad, _LANES)

    if alpha is None:
        alpha_arr = jnp.ones((c,), jnp.float32)                  # at == 1
    else:
        alpha_arr = jnp.asarray(alpha, jnp.float32).reshape(c)

    kernel = functools.partial(
        _focal_loss_kernel, gamma=float(gamma), num_classes=c,
        n_valid=n, tile_r=tile_r, needs_mask=(n_pad != n))

    itemsize = jnp.dtype(inputs.dtype).itemsize
    cost = pl.CostEstimate(
        flops=12 * n_pad * c,
        transcendentals=n_pad * (c + 2),
        bytes_accessed=n_pad * c * itemsize + n_pad * 4 + c * 4 + n_pad * 4)

    focal_padded = pl.pallas_call(
        kernel,
        out_shape=jax.ShapeDtypeStruct((rows_pad, _LANES), jnp.float32),
        grid=(num_tiles,),
        in_specs=[
            pl.BlockSpec((c, tile_r, _LANES), lambda i: (0, i, 0)),
            pl.BlockSpec((tile_r, _LANES), lambda i: (i, 0)),
            pl.BlockSpec(memory_space=pltpu.MemorySpace.SMEM),   # alpha scalars
        ],
        out_specs=pl.BlockSpec((tile_r, _LANES), lambda i: (i, 0)),
        compiler_params=pltpu.CompilerParams(
            dimension_semantics=("parallel",)),
        cost_estimate=cost,
    )(logits_r, targets_r, alpha_arr)

    focal_flat = focal_padded.reshape(-1)[:n]
    if reduction == "mean":
        return jnp.mean(focal_flat)
    if reduction == "sum":
        return jnp.sum(focal_flat)
    return focal_flat


def _focal_loss_ref(inputs, targets, alpha=None, gamma=1.0, reduction="mean"):
    """Pure-JAX reference mirroring the PyTorch module (compute in f32)."""
    inputs = jnp.asarray(inputs).astype(jnp.float32)
    logp = jax.nn.log_softmax(inputs, axis=-1)
    ce = -jnp.take_along_axis(logp, targets[:, None], axis=-1)[:, 0]
    pt = jnp.exp(-ce)
    if alpha is not None:
        ce = alpha[targets] * ce
    focal = jnp.maximum(1.0 - pt, 0.0) ** gamma * ce
    if reduction == "mean":
        return focal.mean()
    if reduction == "sum":
        return focal.sum()
    return focal


if __name__ == "__main__":
    key = jax.random.PRNGKey(0)
    k1, k2, k3, k4 = jax.random.split(key, 4)

    C = 3  # 3-class model
    alpha = jnp.array([0.5, 1.0, 2.0], dtype=jnp.float32)

    # Small case (single tile, padded lanes): all reduction modes.
    N = 8
    logits = jax.random.normal(k1, (N, C), dtype=jnp.float32) * 2.0
    targets = jax.random.randint(k2, (N,), 0, C, dtype=jnp.int32)

    out = jax.block_until_ready(
        focal_loss(logits, targets, alpha=alpha, gamma=1.0, reduction="mean"))
    ref = _focal_loss_ref(logits, targets, alpha=alpha, gamma=1.0, reduction="mean")
    assert jnp.allclose(out, ref, rtol=1e-5, atol=1e-5), (out, ref)

    out_none = jax.block_until_ready(
        focal_loss(logits, targets, alpha=None, gamma=2.0, reduction="none"))
    ref_none = _focal_loss_ref(logits, targets, alpha=None, gamma=2.0, reduction="none")
    assert jnp.allclose(out_none, ref_none, rtol=1e-5, atol=1e-5)

    out_sum = jax.block_until_ready(
        focal_loss(logits, targets, alpha=alpha, gamma=1.5, reduction="sum"))
    ref_sum = _focal_loss_ref(logits, targets, alpha=alpha, gamma=1.5, reduction="sum")
    assert jnp.allclose(out_sum, ref_sum, rtol=1e-4, atol=1e-4)

    # Larger case exercising multiple grid tiles + padding mask.
    N2 = 2500
    logits2 = jax.random.normal(k3, (N2, C), dtype=jnp.float32)
    targets2 = jax.random.randint(k4, (N2,), 0, C, dtype=jnp.int32)
    out2 = jax.block_until_ready(
        focal_loss(logits2, targets2, alpha=alpha, gamma=2.0, reduction="mean",
                   max_tile_rows=8))
    ref2 = _focal_loss_ref(logits2, targets2, alpha=alpha, gamma=2.0, reduction="mean")
    assert jnp.allclose(out2, ref2, rtol=1e-4, atol=1e-5), (out2, ref2)

    # Native-dtype (bf16) path: no wrapper-side upcast, cast happens in-VMEM.
    logits_bf = logits.astype(jnp.bfloat16)
    out_bf = jax.block_until_ready(
        focal_loss(logits_bf, targets, alpha=alpha, gamma=1.0, reduction="mean"))
    ref_bf = _focal_loss_ref(logits_bf, targets, alpha=alpha, gamma=1.0,
                             reduction="mean")
    assert jnp.allclose(out_bf, ref_bf, rtol=1e-3, atol=1e-3), (out_bf, ref_bf)

    print("KERNEL_OK")
</pallas_src>

<mosaic_0001>
module attributes {stable_mosaic.version = 11 : i64} {
  func.func @_focal_loss_kernel(%arg0: i32, %arg1: memref<3x8x128xf32, #tpu.memory_space<vmem>>, %arg2: memref<8x128xi32, #tpu.memory_space<vmem>>, %arg3: memref<3xf32, #tpu.memory_space<smem>>, %arg4: memref<8x128xf32, #tpu.memory_space<vmem>>) attributes {dimension_semantics = [#tpu.dimension_semantics<parallel>], iteration_bounds = array<i64: 1>, scalar_prefetch = 0 : i64, scratch_operands = 0 : i64, tpu.core_type = #tpu.core_type<tc>, window_params = [{transform_indices = @transform_0, window_bounds = array<i64: 3, 8, 128>}, {transform_indices = @transform_1, window_bounds = array<i64: 8, 128>}, {transform_indices = @transform_2, window_bounds = array<i64: 3>}, {transform_indices = @transform_3, window_bounds = array<i64: 8, 128>}]} {
    %c0 = arith.constant 0 : index
    %c0_0 = arith.constant 0 : index
    %0 = vector.load %arg2[%c0, %c0_0] : memref<8x128xi32, #tpu.memory_space<vmem>>, vector<8x128xi32>
    %c0_1 = arith.constant 0 : index
    %c0_2 = arith.constant 0 : index
    %c0_3 = arith.constant 0 : index
    %1 = vector.load %arg1[%c0_1, %c0_2, %c0_3] : memref<3x8x128xf32, #tpu.memory_space<vmem>>, vector<1x8x128xf32>
    %2 = vector.shape_cast %1 : vector<1x8x128xf32> to vector<8x128xf32>
    %c1 = arith.constant 1 : index
    %c0_4 = arith.constant 0 : index
    %c0_5 = arith.constant 0 : index
    %3 = vector.load %arg1[%c1, %c0_4, %c0_5] : memref<3x8x128xf32, #tpu.memory_space<vmem>>, vector<1x8x128xf32>
    %4 = vector.shape_cast %3 : vector<1x8x128xf32> to vector<8x128xf32>
    %c2 = arith.constant 2 : index
    %c0_6 = arith.constant 0 : index
    %c0_7 = arith.constant 0 : index
    %5 = vector.load %arg1[%c2, %c0_6, %c0_7] : memref<3x8x128xf32, #tpu.memory_space<vmem>>, vector<1x8x128xf32>
    %6 = vector.shape_cast %5 : vector<1x8x128xf32> to vector<8x128xf32>
    %7 = arith.maximumf %2, %4 : vector<8x128xf32>
    %8 = arith.maximumf %7, %6 : vector<8x128xf32>
    %cst = arith.constant 0.000000e+00 : f32
    %9 = vector.broadcast %cst : f32 to vector<8x128xf32>
    %cst_8 = arith.constant 0.000000e+00 : f32
    %10 = vector.broadcast %cst_8 : f32 to vector<8x128xf32>
    %cst_9 = arith.constant 0.000000e+00 : f32
    %11 = vector.broadcast %cst_9 : f32 to vector<8x128xf32>
    %12 = arith.subf %2, %8 : vector<8x128xf32>
    %13 = math.exp %12 : vector<8x128xf32>
    %14 = arith.addf %9, %13 : vector<8x128xf32>
    %c0_i32 = arith.constant 0 : i32
    %15 = vector.broadcast %c0_i32 : i32 to vector<8x128xi32>
    %16 = arith.cmpi eq, %0, %15 : vector<8x128xi32>
    %17 = arith.select %16, %12, %10 : vector<8x128xi1>, vector<8x128xf32>
    %c0_10 = arith.constant 0 : index
    %18 = memref.load %arg3[%c0_10] : memref<3xf32, #tpu.memory_space<smem>>
    %19 = vector.broadcast %18 : f32 to vector<8x128xf32>
    %20 = arith.select %16, %19, %11 : vector<8x128xi1>, vector<8x128xf32>
    %21 = arith.subf %4, %8 : vector<8x128xf32>
    %22 = math.exp %21 : vector<8x128xf32>
    %23 = arith.addf %14, %22 : vector<8x128xf32>
    %c1_i32 = arith.constant 1 : i32
    %24 = vector.broadcast %c1_i32 : i32 to vector<8x128xi32>
    %25 = arith.cmpi eq, %0, %24 : vector<8x128xi32>
    %26 = arith.select %25, %21, %17 : vector<8x128xi1>, vector<8x128xf32>
    %c1_11 = arith.constant 1 : index
    %27 = memref.load %arg3[%c1_11] : memref<3xf32, #tpu.memory_space<smem>>
    %28 = vector.broadcast %27 : f32 to vector<8x128xf32>
    %29 = arith.select %25, %28, %20 : vector<8x128xi1>, vector<8x128xf32>
    %30 = arith.subf %6, %8 : vector<8x128xf32>
    %31 = math.exp %30 : vector<8x128xf32>
    %32 = arith.addf %23, %31 : vector<8x128xf32>
    %c2_i32 = arith.constant 2 : i32
    %33 = vector.broadcast %c2_i32 : i32 to vector<8x128xi32>
    %34 = arith.cmpi eq, %0, %33 : vector<8x128xi32>
    %35 = arith.select %34, %30, %26 : vector<8x128xi1>, vector<8x128xf32>
    %c2_12 = arith.constant 2 : index
    %36 = memref.load %arg3[%c2_12] : memref<3xf32, #tpu.memory_space<smem>>
    %37 = vector.broadcast %36 : f32 to vector<8x128xf32>
    %38 = arith.select %34, %37, %29 : vector<8x128xi1>, vector<8x128xf32>
    %39 = math.log %32 : vector<8x128xf32>
    %40 = arith.subf %39, %35 : vector<8x128xf32>
    %cst_13 = arith.constant 0.000000e+00 : f32
    %41 = vector.broadcast %cst_13 : f32 to vector<8x128xf32>
    %42 = arith.subf %41, %40 : vector<8x128xf32>
    %43 = math.exp %42 : vector<8x128xf32>
    %44 = arith.mulf %38, %40 : vector<8x128xf32>
    %cst_14 = arith.constant 1.000000e+00 : f32
    %45 = vector.broadcast %cst_14 : f32 to vector<8x128xf32>
    %46 = arith.subf %45, %43 : vector<8x128xf32>
    %cst_15 = arith.constant 0.000000e+00 : f32
    %47 = vector.broadcast %cst_15 : f32 to vector<8x128xf32>
    %48 = arith.maximumf %46, %47 : vector<8x128xf32>
    %49 = arith.mulf %48, %44 : vector<8x128xf32>
    %50 = tpu.iota {dimensions = array<i32: 0>} : vector<8x128xi32>
    %51 = tpu.iota {dimensions = array<i32: 1>} : vector<8x128xi32>
    %c8_i32 = arith.constant 8 : i32
    %52 = arith.muli %arg0, %c8_i32 : i32
    %53 = vector.broadcast %52 : i32 to vector<8x128xi32>
    %54 = arith.addi %53, %50 : vector<8x128xi32>
    %c128_i32 = arith.constant 128 : i32
    %55 = vector.broadcast %c128_i32 : i32 to vector<8x128xi32>
    %56 = arith.muli %54, %55 : vector<8x128xi32>
    %57 = arith.addi %56, %51 : vector<8x128xi32>
    %c8_i32_16 = arith.constant 8 : i32
    %58 = vector.broadcast %c8_i32_16 : i32 to vector<8x128xi32>
    %59 = arith.cmpi slt, %57, %58 : vector<8x128xi32>
    %cst_17 = arith.constant 0.000000e+00 : f32
    %60 = vector.broadcast %cst_17 : f32 to vector<8x128xf32>
    %61 = arith.select %59, %49, %60 : vector<8x128xi1>, vector<8x128xf32>
    %c0_18 = arith.constant 0 : index
    %c0_19 = arith.constant 0 : index
    %62 = vector.load %arg4[%c0_18, %c0_19] : memref<8x128xf32, #tpu.memory_space<vmem>>, vector<8x128xf32>
    tpu.vector_store %arg4[%c0_18, %c0_19], %61 {strides = array<i32>} : memref<8x128xf32, #tpu.memory_space<vmem>>, vector<8x128xf32>,
    return
  }
  func.func @transform_0(%arg0: i32) -> (i32, i32, i32) {
    %c0_i32 = arith.constant 0 : i32
    %c0_i32_0 = arith.constant 0 : i32
    %c0_i32_1 = arith.constant 0 : i32
    return %c0_i32, %arg0, %c0_i32_0 : i32, i32, i32
  }
  func.func @transform_1(%arg0: i32) -> (i32, i32) {
    %c0_i32 = arith.constant 0 : i32
    %c0_i32_0 = arith.constant 0 : i32
    return %arg0, %c0_i32 : i32, i32
  }
  func.func @transform_2(%arg0: i32) -> i32 {
    %c0_i32 = arith.constant 0 : i32
    %c0_i32_0 = arith.constant 0 : i32
    return %c0_i32 : i32
  }
  func.func @transform_3(%arg0: i32) -> (i32, i32) {
    %c0_i32 = arith.constant 0 : i32
    %c0_i32_0 = arith.constant 0 : i32
    return %arg0, %c0_i32 : i32, i32
  }
}

</mosaic_0001>

<bundles_post_ra>
// kernel: tpu_custom_call.1
= control target key start
LH: loop header
LB: loop body
LE: loop exit
PB: predicated region body
PF: predicated region fallthrough
CT: control target
= control target key end

     0   :  { %8 = vsyncpa [#allocation3], 0  ;;  %s303_s0 = inlined_call_operand.hbm [shape: f32[3,8,128], index: 0, kind: input, shape index: {}]   ;;  %s304_s1 = inlined_call_operand.hbm [shape: s32[8,128], index: 1, kind: input, shape index: {}]   ;;  %s305_s2 = inlined_call_operand.vmem [shape: f32[3], index: 2, kind: input, shape index: {}]   ;;  %s306_s3 = inlined_call_operand.hbm [shape: f32[8,128], index: 3, kind: output, shape index: {}]  }
   0x1   :  { %9 = vsyncpa [#allocation7], 0 }
   0x2   :  { %10 = vsyncpa [#allocation5], 0 }
   0x3   :  { %11 = vsyncpa [#allocation4], 0  ;;  %s232_s12 = smov [#allocation2]   ;;  %s146_s16 = scalar_lea.hbm %s303_s0, 384 }
   0x4   :  { %s17_s13 = sshll.u32 %s232_s12, 4  ;;  %p147_p0 = scmp.ne.s32.totalorder %s303_s0, %s146_s16  ;;  %s18_s13 = int_to_ptr.vmem [resolvable:$true] %s17_s13 }
   0x5   :  { %p150_p1 = scmp.lt.u32.totalorder %s146_s16, %s303_s0 }
   0x7   :  { %p152_p2 = pnand %p150_p1, %p147_p0 }
   0x9   :  { %155 = shalt.err (!%p152_p2)
}
   0xa   :  { %s156_s21 = scalar_lea.vmem %s18_s13, 384  ;;  %p161_p4 = scmp.lt.s32.totalorder %s18_s13, %s18_s13 }
   0xb   :  { %p157_p3 = scmp.ne.s32.totalorder %s18_s13, %s156_s21  ;;  %p162_p5 = scmp.lt.s32.totalorder %s156_s21, %s156_s21 }
   0xd   :  { %p163_p6 = por %p162_p5, %p161_p4 }
   0xf   :  { %p164_p7 = pnand %p163_p6, %p157_p3 }
  0x11   :  { %167 = shalt.err (!%p164_p7)
}
  0x12   :  { %s233_s22 = smov 128   ;;  %s234_s23 = smov 8  }
  0x13   :  { %23 = dma.hbm_to_vmem [thread:$0]  %s303_s0, 384, %s18_s13, [#allocation3], %s233_s22, %s233_s22, %s234_s23  }
  0x14   :  { %s235_s26 = smov [#allocation6]   ;;  %s40_s30 = sshll.u32 %s305_s2, 4  ;;  %s41_s30 = int_to_ptr.vmem [resolvable:$true] %s40_s30 }
  0x15   :  { %s30_s27 = sshll.u32 %s235_s26, 4  ;;  %s168_s6 = scalar_lea.hbm %s304_s1, 128  ;;  %s31_s27 = int_to_ptr.vmem [resolvable:$true] %s30_s27 }
  0x16   :  { %p169_p8 = scmp.ne.s32.totalorder %s304_s1, %s168_s6  ;;  %p172_p9 = scmp.lt.u32.totalorder %s168_s6, %s304_s1 }
  0x18   :  { %p174_p10 = pnand %p172_p9, %p169_p8 }
  0x1a   :  { %177 = shalt.err (!%p174_p10)
}
  0x1b   :  { %s178_s0 = scalar_lea.vmem %s31_s27, 128  ;;  %p183_p12 = scmp.lt.s32.totalorder %s31_s27, %s31_s27 }
  0x1c   :  { %p179_p11 = scmp.ne.s32.totalorder %s31_s27, %s178_s0  ;;  %p184_p13 = scmp.lt.s32.totalorder %s178_s0, %s178_s0 }
  0x1e   :  { %p185_p0 = por %p184_p13, %p183_p12 }
  0x20   :  { %p186_p1 = pnand %p185_p0, %p179_p11 }
  0x22   :  { %189 = shalt.err (!%p186_p1)
}
  0x23   :  { %33 = dma.hbm_to_vmem [thread:$0]  %s304_s1, 128, %s31_s27, [#allocation7]  }
  0x24   :  { %s190_s12 = scalar_lea.vmem %s41_s30, 16  ;;  %p195_p3 = scmp.lt.s32.totalorder %s41_s30, %s41_s30 }
  0x25   :  { %p191_p2 = scmp.ne.s32.totalorder %s41_s30, %s190_s12  ;;  %p196_p4 = scmp.lt.s32.totalorder %s190_s12, %s190_s12 }
  0x27   :  { %p197_p5 = por %p196_p4, %p195_p3 }
  0x29   :  { %p198_p6 = pnand %p197_p5, %p191_p2 }
  0x2b   :  { %201 = shalt.err (!%p198_p6)
}
  0x2c   :  { %s236_s13 = smov [#allocation8]  }
  0x2d   :  { %43 = dma.vmem_to_smem %s41_s30, 16, %s236_s13, [#allocation5]  }
  0x2e   :  { %224 = dma.done.wait [#allocation3], 384  }
  0x2f   :  { %225 = vsyncadd [#allocation3], 4294966912 }
  0x30   :  { %226 = dma.done.wait [#allocation7], 128  }
  0x31   :  { %227 = vsyncadd [#allocation7], 4294967168 }
  0x32   :  { %228 = dma.done.wait [#allocation5], 16  }
  0x33   :  { %229 = vsyncadd [#allocation5], 4294967280 }
  0x34   :  { %53 = sfence }
  0x35   :  { %v55_v0 = vld [vmem:[#allocation2] sm:$0xff]  ;;  %v57_v1 = vld [vmem:[#allocation2 + $0x8] sm:$0xff]  ;;  %v59_v2 = vld [vmem:[#allocation2 + $0x10] sm:$0xff]  ;;  %s68_s1 = sld [smem:[#allocation8]]  ;;  %s128_s14 = sld [smem:[#allocation8 + $0x1]]  ;;  %v99_v25 = vlaneseq }
  0x36   :  { %v60_v3 = vmax.f32 %v55_v0, %v57_v1  ;;  %v54_v15 = vld [vmem:[#allocation6] sm:$0xff]  ;;  %s129_s15 = sld [smem:[#allocation8 + $0x2]]  ;;  %s237_s16 = smov [#allocation9]  }
  0x37   :  { %vm66_vm0 = vcmp.eq.s32.totalorder %v54_v15, 0  ;;  %vm75_vm1 = vcmp.eq.s32.totalorder %v54_v15, 1  ;;  %vm84_vm2 = vcmp.eq.s32.totalorder %v54_v15, 2  ;;  %v100_v29 = vshrl.u32 %v99_v25, 7  ;;  %s117_s17 = sshll.u32 %s237_s16, 4  ;;  %s118_s17 = int_to_ptr.vmem [resolvable:$true] %s117_s17 }
  0x38   :  { %v61_v4 = vmax.f32 %v60_v3, %v59_v2  ;;  %v102_v32 = vand.u32 127, %v99_v25  ;;  %s202_s18 = scalar_lea.vmem %s118_s17, 128  ;;  %p207_p8 = scmp.lt.s32.totalorder %s118_s17, %s118_s17 }
  0x39   :  { %v106_v33 = vmul.u32 128, %v100_v29  ;;  %p203_p7 = scmp.ne.s32.totalorder %s118_s17, %s202_s18  ;;  %p208_p9 = scmp.lt.s32.totalorder %s202_s18, %s202_s18 }
  0x3a   :  { %v62_v5 = vsub.f32 %v55_v0, %v61_v4  ;;  %v71_v6 = vsub.f32 %v57_v1, %v61_v4  ;;  %v80_v7 = vsub.f32 %v59_v2, %v61_v4 }
  0x3b   :  { %v69_v26 = vstv %s68_s1  ;;  %v78_v28 = vstv %s128_s14  ;;  %v107_v36 = vadd.s32 %v106_v33, %v102_v32  ;;  %p209_p10 = por %p208_p9, %p207_p8 }
  0x3c   :  { %v63_v8 = vmul.f32 1.442695, %v62_v5  ;;  %v72_v9 = vmul.f32 1.442695, %v71_v6  ;;  %v81_v10 = vmul.f32 1.442695, %v80_v7  ;;  %v87_v31 = vstv %s129_s15 }
  0x3d   :  { %v67_v17 = vsel %vm66_vm0, %v62_v5, 0.0  ;;  %v70_v27 = vsel %vm66_vm0, %v69_v26, 0.0  ;;  %vm108_vm3 = vcmp.lt.s32.totalorder %v107_v36, 8  ;;  %p210_p11 = pnand %p209_p10, %p203_p7 }
  0x3e   :  { %136 = vpow2.f32 %v63_v8  ;;  %v76_v18 = vsel %vm75_vm1, %v71_v6, %v67_v17  ;;  %v79_v30 = vsel %vm75_vm1, %v78_v28, %v70_v27 }
  0x3f   :  { %138 = vpow2.f32 %v72_v9  ;;  %v85_v20 = vsel %vm84_vm2, %v80_v7, %v76_v18  ;;  %v88_v34 = vsel %vm84_vm2, %v87_v31, %v79_v30 }
  0x40   :  { %140 = vpow2.f32 %v81_v10 }
  0x48   :  { %v137_v11 = vpop.eup %136 }
  0x49   :  { %v139_v12 = vpop.eup %138 }
  0x4a   :  { %v141_v13 = vpop.eup %140  ;;  %v74_v14 = vadd.f32 %v139_v12, %v137_v11 }
  0x4c   :  { %v83_v16 = vadd.f32 %v141_v13, %v74_v14 }
  0x4e   :  { %142 = vlog2.f32 %v83_v16 }
  0x58   :  { %v143_v19 = vpop.eup %142 }
  0x59   :  { %v90_v21 = vmul.f32 0.6931472, %v143_v19 }
  0x5b   :  { %v91_v22 = vsub.f32 %v90_v21, %v85_v20 }
  0x5d   :  { %v92_v23 = vsub.f32 0.0, %v91_v22  ;;  %v95_v37 = vmul.f32 %v91_v22, %v88_v34 }
  0x5f   :  { %v93_v24 = vmul.f32 1.442695, %v92_v23 }
  0x61   :  { %144 = vpow2.f32 %v93_v24 }
  0x6b   :  { %v145_v35 = vpop.eup %144 }
  0x6c   :  { %v96_v38 = vsub.f32 1.0, %v145_v35 }
  0x6e   :  { %v97_v39 = vmax.f32 %v96_v38, 0.0 }
  0x70   :  { %v98_v40 = vmul.f32 %v97_v39, %v95_v37 }
  0x72   :  { %v109_v41 = vsel %vm108_vm3, %v98_v40, 0.0 }
  0x73   :  { %110 = vst [vmem:[#allocation9] sm:$0xff] %v109_v41 }
  0x74   :  { %213 = shalt.err (!%p210_p11)
}
  0x75   :  { %s214_s21 = scalar_lea.hbm %s306_s3, 128 }
  0x76   :  { %p215_p12 = scmp.ne.s32.totalorder %s306_s3, %s214_s21  ;;  %p218_p13 = scmp.lt.u32.totalorder %s214_s21, %s306_s3 }
  0x78   :  { %p220_p0 = pnand %p218_p13, %p215_p12 }
  0x7a   :  { %223 = shalt.err (!%p220_p0)
}
  0x7b   :  { %120 = dma.vmem_to_hbm [thread:$0]  %s118_s17, 128, %s306_s3, [#allocation4]  }
  0x7c   :  { %230 = dma.done.wait [#allocation4], 128  }
  0x7d   :  { %231 = vsyncadd [#allocation4], 4294967168 }
  0x7e   :  { %124 = vsyncpa [#allocation3], 1 }
  0x7f   :  { %125 = vsyncpa [#allocation7], 1 }
  0x80   :  { %126 = vsyncpa [#allocation4], 1 }
  0x81   :  { %127 = vsyncpa [#allocation5], 1 }

</bundles_post_ra>
